<compile_context>
chip_gen: v5e
topology: v5e:2x2
jax: 0.10.0
libtpu: 0.0.40
codegen_flags: <defaults>
</compile_context>

<pallas_src>
import jax
import jax.numpy as jnp
from jax import lax
from jax.experimental import pallas as pl
from jax.experimental.pallas import tpu as pltpu


# ---------------------------------------------------------------------------
# Path A: VMEM-staged permutation (one-hot matmul on the MXU).
# ---------------------------------------------------------------------------
def _make_perm_matmul_kernel(bt: int):
    def kernel(p_ref, x_ref, o_ref):
        # p_ref: (T, T) one-hot permutation (row t has a 1 at forward_idx[t]).
        # x_ref / o_ref: (bt, T, C) contiguous slabs in VMEM.
        p = p_ref[...]
        for b in range(bt):  # static unrolled loop over the batch tile
            o_ref[b] = jnp.dot(
                p, x_ref[b], preferred_element_type=jnp.float32
            ).astype(o_ref.dtype)

    return kernel


def _shuffle_vmem(patches, forward_indexes, bt):
    B, T, C = patches.shape
    itemsize = jnp.dtype(patches.dtype).itemsize
    # One-hot permutation matrix: out[t, :] = x[forward_indexes[t], :].
    onehot = (
        forward_indexes[:, None] == jnp.arange(T, dtype=jnp.int32)[None, :]
    ).astype(patches.dtype)

    return pl.pallas_call(
        _make_perm_matmul_kernel(bt),
        out_shape=jax.ShapeDtypeStruct((B, T, C), patches.dtype),
        grid_spec=pltpu.PrefetchScalarGridSpec(
            num_scalar_prefetch=0,
            grid=(B // bt,),
            in_specs=[
                pl.BlockSpec((T, T), lambda g: (0, 0)),        # resident one-hot
                pl.BlockSpec((bt, T, C), lambda g: (g, 0, 0)),  # contiguous slab
            ],
            out_specs=pl.BlockSpec((bt, T, C), lambda g: (g, 0, 0)),
        ),
        compiler_params=pltpu.CompilerParams(
            dimension_semantics=("parallel",),
        ),
        cost_estimate=pl.CostEstimate(
            flops=int(2 * B * T * T * C),
            transcendentals=0,
            bytes_accessed=int(2 * B * T * C * itemsize + T * T * itemsize),
        ),
    )(onehot, patches)


# ---------------------------------------------------------------------------
# Path B: pure HBM->HBM DMA row gather (large per-row payload / huge slabs).
# ---------------------------------------------------------------------------
def _make_gather_kernel(t_total: int, chunk: int, n_inflight: int, n_slots: int):
    def kernel(idx_ref, x_hbm, o_hbm, sems):
        # idx_ref: (T,) int32 permutation in SMEM (scalar prefetch).
        # x_hbm / o_hbm: (B, T, C) refs left in HBM (memory_space=pl.ANY).
        row0 = pl.program_id(0) * chunk
        rows = jnp.minimum(chunk, t_total - row0)  # only last partition ragged

        def copy_row(t, slot):
            # Output row t <- input row forward_indexes[t] for all batches.
            return pltpu.make_async_copy(
                x_hbm.at[:, pl.ds(idx_ref[t], 1), :],
                o_hbm.at[:, pl.ds(t, 1), :],
                sems.at[slot],
            )

        # Prime: unrolled (n_inflight is a small static constant) so the LLO
        # scheduler can co-issue descriptor pushes with the scalar math.
        for i in range(n_inflight):
            @pl.when(i < rows)
            def _():
                copy_row(row0 + i, i % n_slots).start()

        # Steady state: start row i+n_inflight *before* waiting on row i; the
        # ring has n_inflight+1 slots so the two never share a semaphore and
        # the next SMEM read / descriptor issue is not shadowed by the wait.
        @pl.loop(0, rows)
        def _drain(i):
            j = i + n_inflight

            @pl.when(j < rows)
            def _():
                copy_row(row0 + j, j % n_slots).start()

            copy_row(row0 + i, i % n_slots).wait()

    return kernel


def _shuffle_hbm_gather(patches, forward_indexes, num_partitions, max_inflight):
    B, T, C = patches.shape
    P = max(1, min(num_partitions, T))
    chunk = (T + P - 1) // P
    n_inflight = max(1, min(max_inflight, chunk))
    n_slots = n_inflight + 1  # decouple start(i+n_inflight) from wait(i)
    itemsize = jnp.dtype(patches.dtype).itemsize

    return pl.pallas_call(
        _make_gather_kernel(T, chunk, n_inflight, n_slots),
        out_shape=jax.ShapeDtypeStruct((B, T, C), patches.dtype),
        grid_spec=pltpu.PrefetchScalarGridSpec(
            num_scalar_prefetch=1,
            grid=(P,),
            in_specs=[pl.BlockSpec(memory_space=pl.ANY)],   # raw HBM ref
            out_specs=pl.BlockSpec(memory_space=pl.ANY),    # raw HBM ref
            scratch_shapes=[pltpu.SemaphoreType.DMA((n_slots,))],
        ),
        compiler_params=pltpu.CompilerParams(
            dimension_semantics=("parallel",),
        ),
        cost_estimate=pl.CostEstimate(
            flops=0,
            transcendentals=0,
            bytes_accessed=int(2 * B * T * C * itemsize),
        ),
    )(forward_indexes, patches)


# ---------------------------------------------------------------------------
# Wrapper: PatchShuffle.forward
# ---------------------------------------------------------------------------
def _chip_defaults():
    # num_partitions: 1 on single-TC chips (v5e/v6e), 2 on v7x (2 TCs/chip).
    # max_inflight: deeper DMA ring on v7x (faster HBM -> issue latency matters).
    try:
        kind = jax.devices()[0].device_kind.lower()
    except Exception:  # pragma: no cover - defensive
        kind = ""
    if "v7" in kind:
        return 2, 16
    return 1, 8


def patch_shuffle(patches: jax.Array, key: jax.Array,
                  *, num_partitions=None, max_inflight=None, force_path=None):
    """Pallas implementation of PatchShuffle.forward.

    patches: (B, T, C)
    returns (shuffled (B,T,C), forward_indexes (B,T) int32,
             backward_indexes (B,T) int32)
    """
    B, T, C = patches.shape

    # random_indexes(T): permutation + its inverse (scatter, not argsort).
    forward_indexes = jax.random.permutation(key, T).astype(jnp.int32)
    backward_indexes = (
        jnp.zeros((T,), jnp.int32)
        .at[forward_indexes]
        .set(jnp.arange(T, dtype=jnp.int32))
    )

    itemsize = jnp.dtype(patches.dtype).itemsize
    slab_bytes = T * C * itemsize

    # Batch tile for the VMEM path: ~2 MiB input blocks to amortise the
    # per-grid-step overhead; must divide B.
    bt = max(1, min(B, (2 << 20) // max(1, slab_bytes)))
    while B % bt:
        bt -= 1
    onehot_bytes = T * T * itemsize
    # double-buffered in/out blocks + (possibly double-buffered) one-hot
    vmem_path_bytes = 4 * bt * slab_bytes + 2 * onehot_bytes

    use_vmem = (
        jnp.issubdtype(patches.dtype, jnp.floating)
        and vmem_path_bytes <= (12 << 20)     # fits default scoped VMEM on all gens
    )
    if force_path == "vmem":
        use_vmem = True
    elif force_path == "hbm":
        use_vmem = False

    if use_vmem:
        shuffled = _shuffle_vmem(patches, forward_indexes, bt)
    else:
        dflt_p, dflt_inflight = _chip_defaults()
        shuffled = _shuffle_hbm_gather(
            patches, forward_indexes,
            num_partitions=num_partitions if num_partitions else dflt_p,
            max_inflight=max_inflight if max_inflight else dflt_inflight,
        )

    # repeat('t -> g t', g=B) — broadcast views, no tiled copies.
    fwd_b = jnp.broadcast_to(forward_indexes[None, :], (B, T))
    bwd_b = jnp.broadcast_to(backward_indexes[None, :], (B, T))
    return shuffled, fwd_b, bwd_b


if __name__ == "__main__":
    key = jax.random.PRNGKey(0)
    k_data, k_perm = jax.random.split(key)

    B, T, C = 2, 8, 32
    patches = jax.random.normal(k_data, (B, T, C), dtype=jnp.float32)

    shuffled, fwd_idx, bwd_idx = patch_shuffle(patches, k_perm)
    shuffled = jax.block_until_ready(shuffled)

    # Reference check (pure JAX gather along T).
    ref = jnp.take(patches, fwd_idx[0], axis=1)
    assert shuffled.shape == (B, T, C)
    assert fwd_idx.shape == (B, T) and bwd_idx.shape == (B, T)
    assert jnp.allclose(shuffled, ref, rtol=1e-4, atol=1e-5)
    # backward must be the inverse permutation of forward.
    assert jnp.array_equal(bwd_idx[0], jnp.argsort(fwd_idx[0]))
    # Unshuffling with backward_indexes must recover the original order.
    unshuffled = jnp.take(shuffled, bwd_idx[0], axis=1)
    assert jnp.allclose(unshuffled, patches, rtol=1e-4, atol=1e-5)

    print("KERNEL_OK")
</pallas_src>

<mosaic_0001>
module attributes {stable_mosaic.version = 11 : i64} {
  func.func @kernel(%arg0: i32, %arg1: memref<8x8xf32, #tpu.memory_space<vmem>>, %arg2: memref<2x8x32xf32, #tpu.memory_space<vmem>>, %arg3: memref<2x8x32xf32, #tpu.memory_space<vmem>>) attributes {dimension_semantics = [#tpu.dimension_semantics<parallel>], iteration_bounds = array<i64: 1>, scalar_prefetch = 0 : i64, scratch_operands = 0 : i64, tpu.core_type = #tpu.core_type<tc>, window_params = [{pipeline_mode = #tpu.pipeline_mode<synchronous>, transform_indices = @transform_0, window_bounds = array<i64: 8, 8>}, {transform_indices = @transform_1, window_bounds = array<i64: 2, 8, 32>}, {transform_indices = @transform_2, window_bounds = array<i64: 2, 8, 32>}]} {
    %c0 = arith.constant 0 : index
    %c0_0 = arith.constant 0 : index
    %0 = vector.load %arg1[%c0, %c0_0] : memref<8x8xf32, #tpu.memory_space<vmem>>, vector<8x8xf32>
    %c0_1 = arith.constant 0 : index
    %c0_2 = arith.constant 0 : index
    %c0_3 = arith.constant 0 : index
    %1 = vector.load %arg2[%c0_1, %c0_2, %c0_3] : memref<2x8x32xf32, #tpu.memory_space<vmem>>, vector<1x8x32xf32>
    %2 = vector.shape_cast %1 : vector<1x8x32xf32> to vector<8x32xf32>
    %cst = arith.constant dense<0.000000e+00> : vector<8x32xf32>
    %3 = tpu.matmul %0, %2, %cst {dimension_numbers = #tpu.dot_dimension_numbers<[1], [0], [0], [1], [0, 0, 1, 1], [], []>} : vector<8x8xf32>, vector<8x32xf32>, vector<8x32xf32> -> vector<8x32xf32>
    %c0_4 = arith.constant 0 : index
    %c0_5 = arith.constant 0 : index
    %c0_6 = arith.constant 0 : index
    %4 = vector.load %arg3[%c0_4, %c0_5, %c0_6] : memref<2x8x32xf32, #tpu.memory_space<vmem>>, vector<1x8x32xf32>
    %5 = vector.shape_cast %4 : vector<1x8x32xf32> to vector<8x32xf32>
    %6 = vector.shape_cast %3 : vector<8x32xf32> to vector<1x8x32xf32>
    tpu.vector_store %arg3[%c0_4, %c0_5, %c0_6], %6 {strides = array<i32>} : memref<2x8x32xf32, #tpu.memory_space<vmem>>, vector<1x8x32xf32>,
    %c1 = arith.constant 1 : index
    %c0_7 = arith.constant 0 : index
    %c0_8 = arith.constant 0 : index
    %7 = vector.load %arg2[%c1, %c0_7, %c0_8] : memref<2x8x32xf32, #tpu.memory_space<vmem>>, vector<1x8x32xf32>
    %8 = vector.shape_cast %7 : vector<1x8x32xf32> to vector<8x32xf32>
    %cst_9 = arith.constant dense<0.000000e+00> : vector<8x32xf32>
    %9 = tpu.matmul %0, %8, %cst_9 {dimension_numbers = #tpu.dot_dimension_numbers<[1], [0], [0], [1], [0, 0, 1, 1], [], []>} : vector<8x8xf32>, vector<8x32xf32>, vector<8x32xf32> -> vector<8x32xf32>
    %c1_10 = arith.constant 1 : index
    %c0_11 = arith.constant 0 : index
    %c0_12 = arith.constant 0 : index
    %10 = vector.load %arg3[%c1_10, %c0_11, %c0_12] : memref<2x8x32xf32, #tpu.memory_space<vmem>>, vector<1x8x32xf32>
    %11 = vector.shape_cast %10 : vector<1x8x32xf32> to vector<8x32xf32>
    %12 = vector.shape_cast %9 : vector<8x32xf32> to vector<1x8x32xf32>
    tpu.vector_store %arg3[%c1_10, %c0_11, %c0_12], %12 {strides = array<i32>} : memref<2x8x32xf32, #tpu.memory_space<vmem>>, vector<1x8x32xf32>,
    return
  }
  func.func @transform_0(%arg0: i32) -> (i32, i32) {
    %c0_i32 = arith.constant 0 : i32
    %c0_i32_0 = arith.constant 0 : i32
    %c0_i32_1 = arith.constant 0 : i32
    return %c0_i32, %c0_i32_0 : i32, i32
  }
  func.func @transform_1(%arg0: i32) -> (i32, i32, i32) {
    %c0_i32 = arith.constant 0 : i32
    %c0_i32_0 = arith.constant 0 : i32
    %c0_i32_1 = arith.constant 0 : i32
    return %arg0, %c0_i32, %c0_i32_0 : i32, i32, i32
  }
  func.func @transform_2(%arg0: i32) -> (i32, i32, i32) {
    %c0_i32 = arith.constant 0 : i32
    %c0_i32_0 = arith.constant 0 : i32
    %c0_i32_1 = arith.constant 0 : i32
    return %arg0, %c0_i32, %c0_i32_0 : i32, i32, i32
  }
}

</mosaic_0001>

<bundles_post_ra>
// kernel: tpu_custom_call.1
= control target key start
LH: loop header
LB: loop body
LE: loop exit
PB: predicated region body
PF: predicated region fallthrough
CT: control target
= control target key end

     0   :  { %7 = vsyncpa [#allocation3], 0  ;;  %s228_s0 = inlined_call_operand.hbm [shape: f32[8,8], index: 0, kind: input, shape index: {}]   ;;  %s229_s1 = inlined_call_operand.hbm [shape: f32[2,8,32], index: 1, kind: input, shape index: {}]   ;;  %s230_s2 = inlined_call_operand.hbm [shape: f32[2,8,32], index: 2, kind: output, shape index: {}]  }
   0x1   :  { %8 = vsyncpa [#allocation6], 0 }
   0x2   :  { %9 = vsyncpa [#allocation4], 0  ;;  %s15_s11 = sshll.u32 %s228_s0, 4  ;;  %s199_s12 = smov [#allocation2]   ;;  %s16_s11 = int_to_ptr.hbm [resolvable:$true] %s15_s11 }
   0x3   :  { %s17_s13 = sshll.u32 %s199_s12, 4  ;;  %s25_s16 = sshll.u32 %s229_s1, 4  ;;  %s18_s13 = int_to_ptr.vmem [resolvable:$true] %s17_s13  ;;  %s26_s16 = int_to_ptr.hbm [resolvable:$true] %s25_s16 }
   0x4   :  { %20 = dma.hbm_to_vmem [thread:$0]  %s16_s11, 128, %s18_s13, [#allocation3]  }
   0x5   :  { %s200_s17 = smov [#allocation5]   ;;  %s201_s19 = smov 128  }
   0x6   :  { %s27_s18 = sshll.u32 %s200_s17, 4  ;;  %s202_s20 = smov 8   ;;  %s28_s18 = int_to_ptr.vmem [resolvable:$true] %s27_s18 }
   0x7   :  { %33 = dma.hbm_to_vmem [thread:$0]  %s26_s16, 256, %s28_s18, [#allocation6], %s201_s19, %s201_s19, %s202_s20  }
   0x8   :  { %193 = dma.done.wait [#allocation3], 128  }
   0x9   :  { %194 = vsyncadd [#allocation3], 4294967168 }
   0xa   :  { %195 = dma.done.wait [#allocation6], 256  }
   0xb   :  { %196 = vsyncadd [#allocation6], 4294967040  ;;  %vm44_vm0 = vcmask 64512   ;;  %v43_v0 = vld [vmem:[#allocation5] sm:$0xff]  ;;  %v71_v1 = vld [vmem:[#allocation5 + $0x8] sm:$0xff]  ;;  %s203_s0 = smov [#allocation7]  }
   0xc   :  { %v42_v2 = vld [vmem:[#allocation2] sm:$0xff]  ;;  %63 = vmatpush.msra.mxu0 %v43_v0  ;;  %87 = vmatpush.msra.mxu1 %v71_v1  ;;  %s98_s1 = sshll.u32 %s203_s0, 4  ;;  %s100_s23 = sshll.u32 %s230_s2, 4  ;;  %vm68_vm1 = vcmask 261120   ;;  %s99_s1 = int_to_ptr.vmem [resolvable:$true] %s98_s1  ;;  %s101_s23 = int_to_ptr.hbm [resolvable:$true] %s100_s23 }
   0xd   :  { %114 = vmatmul.msk.f32.vlgmr.msra.gmra.mxu0 %vm44_vm0, %v42_v2  ;;  %115 = vmatmul.msk.f32.vlgmr.msra.gmra.mxu1 %vm44_vm0, %v42_v2 }
  0x8a   :  { %v65_v3 = vpop.f32.mrf.mxu0  ;;  %v89_v4 = vpop.f32.mrf.mxu1 }
  0x8b   :  { %69 = vst.msk [vmem:[#allocation7] sm:$0xff] %vm68_vm1, %v65_v3 }
  0x8c   :  { %93 = vst.msk [vmem:[#allocation7 + $0x8] sm:$0xff] %vm68_vm1, %v89_v4 }
  0x8d   :  { %106 = dma.vmem_to_hbm [thread:$0]  %s99_s1, 256, %s101_s23, [#allocation4], %s201_s19, %s201_s19, %s202_s20  }
  0x8e   :  { %197 = dma.done.wait [#allocation4], 256  }
  0x8f   :  { %198 = vsyncadd [#allocation4], 4294967040 }
  0x90   :  { %111 = vsyncpa [#allocation3], 1 }
  0x91   :  { %112 = vsyncpa [#allocation6], 1 }
  0x92   :  { %113 = vsyncpa [#allocation4], 1 }

</bundles_post_ra>
